<compile_context>
chip_gen: v5e
topology: v5e:2x2
jax: 0.10.0
libtpu: 0.0.40
codegen_flags: <defaults>
</compile_context>

<pallas_src>
import jax
import jax.numpy as jnp
from jax.experimental import pallas as pl
from jax.experimental.pallas import tpu as pltpu


def _round_up(n, m):
    return ((n + m - 1) // m) * m


def _leaky_relu(h, slope=0.2):
    # max(h, slope*h) == LeakyReLU(slope) for slope in (0, 1): mul+max only.
    return jnp.maximum(h, slope * h)


def discriminator_kernel(x_ref, w1_ref, b1_ref, w2_ref, b2_ref, w3_ref, b3_ref,
                         o_ref):
    xT = x_ref[...]                                   # (4, TB) f32

    # ---- Layer 1: Linear(4, 256) on the MXU (K=4; MXU has huge slack so the
    # padding waste is free, and it keeps the saturated VPU slot clear).
    h1 = jnp.dot(w1_ref[...], xT,                     # (256, 4) @ (4, TB)
                 preferred_element_type=jnp.float32)  # (256, TB) f32
    h1 = _leaky_relu(h1 + b1_ref[...])                # + (256, 1) lane-bcast

    # ---- Layer 2: Linear(256, 128) on the MXU in bf16, f32 accumulation.
    h2 = jnp.dot(w2_ref[...],                         # (128, 256) bf16
                 h1.astype(jnp.bfloat16),             # (256, TB)  bf16
                 preferred_element_type=jnp.float32)  # (128, TB) f32
    h2 = _leaky_relu(h2 + b2_ref[...])                # + (128, 1) lane-bcast

    # ---- Layer 3: Linear(128, 1) as an M=1 MXU row matmul -> already in the
    # lane-dense (1, TB) output layout, then Sigmoid and a plain store.
    logits = jnp.dot(w3_ref[...], h2,                 # (1, 128) @ (128, TB)
                     preferred_element_type=jnp.float32) + b3_ref[...]
    o_ref[...] = jax.nn.sigmoid(logits).astype(o_ref.dtype)


def discriminator_forward(x, params, *, block_b=4096):
    """x: (B, 4) float32 -> (B, 1) float32."""
    w1, b1, w2, b2, w3, b3 = params
    B = x.shape[0]

    # Batch tile: multiple of 128 (lane-dense last dim), capped at block_b,
    # and split so large batches get >= 2 grid steps (v7x megacore).
    B128 = _round_up(B, 128)
    TB = min(block_b, B128)
    if TB == B128 and TB >= 256:
        TB = _round_up(B128 // 2, 128)
    B_pad = _round_up(B, TB)
    num_tiles = B_pad // TB

    # Pre-transpose x to (4, B_pad): lane-dense tiles, tiny DMA footprint.
    if B_pad != B:
        x = jnp.pad(x, ((0, B_pad - B), (0, 0)))
    xT = x.T                                          # (4, B_pad)

    # bf16 weights only for the big MXU layer; everything else stays f32.
    w2_bf16 = w2.astype(jnp.bfloat16)

    # Grid-invariant operands: full block + constant index map -> fetched once.
    const2d = lambda a: pl.BlockSpec(a.shape, lambda i: (0, 0))

    flops = 2 * B_pad * (4 * 256 + 256 * 128 + 128) + 4 * B_pad * (256 + 128 + 1)
    bytes_accessed = 4 * (xT.size + B_pad
                          + w1.size + b1.size + w2.size + b2.size
                          + w3.size + b3.size)
    cost = pl.CostEstimate(flops=flops, transcendentals=B_pad,
                           bytes_accessed=bytes_accessed)

    out = pl.pallas_call(
        discriminator_kernel,
        out_shape=jax.ShapeDtypeStruct((1, B_pad), jnp.float32),
        grid=(num_tiles,),
        in_specs=[
            pl.BlockSpec((4, TB), lambda i: (0, i)),   # x^T tile (streamed)
            const2d(w1), const2d(b1),
            const2d(w2_bf16), const2d(b2),
            const2d(w3), const2d(b3),
        ],
        out_specs=pl.BlockSpec((1, TB), lambda i: (0, i)),
        compiler_params=pltpu.CompilerParams(
            dimension_semantics=("parallel",),         # megacore on v7x
        ),
        cost_estimate=cost,
    )(xT, w1, b1, w2_bf16, b2, w3, b3)

    return out.reshape(B_pad, 1)[:B]


def init_params(key):
    """Deterministic parameter init matching the PyTorch layer shapes.

    Weights are stored in PyTorch-native (out_features, in_features) layout,
    which is exactly what the transposed-orientation kernel consumes; biases
    are stored as (out_features, 1) columns for lane-broadcast adds.
    """
    k1, k2, k3, k4, k5, k6 = jax.random.split(key, 6)

    def uniform(k, shape, fan_in):
        bound = 1.0 / jnp.sqrt(fan_in)
        return jax.random.uniform(k, shape, jnp.float32, -bound, bound)

    w1 = uniform(k1, (256, 4), 4)
    b1 = uniform(k2, (256, 1), 4)
    w2 = uniform(k3, (128, 256), 256)
    b2 = uniform(k4, (128, 1), 256)
    w3 = uniform(k5, (1, 128), 128)
    b3 = uniform(k6, (1, 1), 128)
    return (w1, b1, w2, b2, w3, b3)


def reference_forward(x, params):
    """Pure-JAX reference mirroring the kernel's precision choices
    (f32 layers 1/3, bf16 matmul with f32 accumulation for layer 2)."""
    w1, b1, w2, b2, w3, b3 = params
    h1 = _leaky_relu(x @ w1.T + b1[:, 0])
    h2 = jnp.dot(h1.astype(jnp.bfloat16), w2.T.astype(jnp.bfloat16),
                 preferred_element_type=jnp.float32) + b2[:, 0]
    h2 = _leaky_relu(h2)
    return jax.nn.sigmoid(h2 @ w3.T + b3[:, 0])


if __name__ == "__main__":
    key = jax.random.PRNGKey(0)
    kx, kx2, kp = jax.random.split(key, 3)

    params = init_params(kp)

    # Small example consistent with the module (features = 4).
    B = 8
    x = jax.random.normal(kx, (B, 4), jnp.float32)
    out = jax.block_until_ready(discriminator_forward(x, params))
    ref = reference_forward(x, params)
    assert out.shape == (B, 1), out.shape
    assert jnp.allclose(out, ref, atol=2e-3, rtol=2e-3), (
        float(jnp.max(jnp.abs(out - ref))))

    # Exercise the multi-tile grid + padding path (2 tiles of 256 here).
    B2 = 300
    x2 = jax.random.normal(kx2, (B2, 4), jnp.float32)
    out2 = jax.block_until_ready(discriminator_forward(x2, params))
    ref2 = reference_forward(x2, params)
    assert out2.shape == (B2, 1), out2.shape
    assert jnp.allclose(out2, ref2, atol=2e-3, rtol=2e-3), (
        float(jnp.max(jnp.abs(out2 - ref2))))

    print("KERNEL_OK")
</pallas_src>

<mosaic_0001>
module attributes {stable_mosaic.version = 11 : i64} {
  func.func @discriminator_kernel(%arg0: i32, %arg1: memref<4x128xf32, #tpu.memory_space<vmem>>, %arg2: memref<256x4xf32, #tpu.memory_space<vmem>>, %arg3: memref<256x1xf32, #tpu.memory_space<vmem>>, %arg4: memref<128x256xbf16, #tpu.memory_space<vmem>>, %arg5: memref<128x1xf32, #tpu.memory_space<vmem>>, %arg6: memref<1x128xf32, #tpu.memory_space<vmem>>, %arg7: memref<1x1xf32, #tpu.memory_space<vmem>>, %arg8: memref<1x128xf32, #tpu.memory_space<vmem>>) attributes {dimension_semantics = [#tpu.dimension_semantics<parallel>], iteration_bounds = array<i64: 1>, scalar_prefetch = 0 : i64, scratch_operands = 0 : i64, tpu.core_type = #tpu.core_type<tc>, window_params = [{transform_indices = @transform_0, window_bounds = array<i64: 4, 128>}, {pipeline_mode = #tpu.pipeline_mode<synchronous>, transform_indices = @transform_1, window_bounds = array<i64: 256, 4>}, {pipeline_mode = #tpu.pipeline_mode<synchronous>, transform_indices = @transform_2, window_bounds = array<i64: 256, 1>}, {pipeline_mode = #tpu.pipeline_mode<synchronous>, transform_indices = @transform_3, window_bounds = array<i64: 128, 256>}, {pipeline_mode = #tpu.pipeline_mode<synchronous>, transform_indices = @transform_4, window_bounds = array<i64: 128, 1>}, {pipeline_mode = #tpu.pipeline_mode<synchronous>, transform_indices = @transform_5, window_bounds = array<i64: 1, 128>}, {pipeline_mode = #tpu.pipeline_mode<synchronous>, transform_indices = @transform_6, window_bounds = array<i64: 1, 1>}, {transform_indices = @transform_7, window_bounds = array<i64: 1, 128>}]} {
    %c0 = arith.constant 0 : index
    %c0_0 = arith.constant 0 : index
    %0 = vector.load %arg1[%c0, %c0_0] : memref<4x128xf32, #tpu.memory_space<vmem>>, vector<4x128xf32>
    %c0_1 = arith.constant 0 : index
    %c0_2 = arith.constant 0 : index
    %1 = vector.load %arg2[%c0_1, %c0_2] : memref<256x4xf32, #tpu.memory_space<vmem>>, vector<256x4xf32>
    %cst = arith.constant dense<0.000000e+00> : vector<256x128xf32>
    %2 = tpu.matmul %1, %0, %cst {dimension_numbers = #tpu.dot_dimension_numbers<[1], [0], [0], [1], [0, 0, 1, 1], [], []>} : vector<256x4xf32>, vector<4x128xf32>, vector<256x128xf32> -> vector<256x128xf32>
    %c0_3 = arith.constant 0 : index
    %c0_4 = arith.constant 0 : index
    %3 = vector.load %arg3[%c0_3, %c0_4] : memref<256x1xf32, #tpu.memory_space<vmem>>, vector<256x1xf32>
    %4 = vector.broadcast %3 : vector<256x1xf32> to vector<256x128xf32>
    %5 = arith.addf %2, %4 : vector<256x128xf32>
    %cst_5 = arith.constant 2.000000e-01 : f32
    %6 = vector.broadcast %cst_5 : f32 to vector<256x128xf32>
    %7 = arith.mulf %6, %5 : vector<256x128xf32>
    %8 = arith.maximumf %5, %7 : vector<256x128xf32>
    %c0_6 = arith.constant 0 : index
    %c0_7 = arith.constant 0 : index
    %9 = vector.load %arg4[%c0_6, %c0_7] : memref<128x256xbf16, #tpu.memory_space<vmem>>, vector<128x256xbf16>
    %10 = arith.truncf %8 : vector<256x128xf32> to vector<256x128xbf16>
    %cst_8 = arith.constant dense<0.000000e+00> : vector<128x128xf32>
    %11 = tpu.matmul %9, %10, %cst_8 {dimension_numbers = #tpu.dot_dimension_numbers<[1], [0], [0], [1], [0, 0, 1, 1], [], []>} : vector<128x256xbf16>, vector<256x128xbf16>, vector<128x128xf32> -> vector<128x128xf32>
    %c0_9 = arith.constant 0 : index
    %c0_10 = arith.constant 0 : index
    %12 = vector.load %arg5[%c0_9, %c0_10] : memref<128x1xf32, #tpu.memory_space<vmem>>, vector<128x1xf32>
    %13 = vector.broadcast %12 : vector<128x1xf32> to vector<128x128xf32>
    %14 = arith.addf %11, %13 : vector<128x128xf32>
    %cst_11 = arith.constant 2.000000e-01 : f32
    %15 = vector.broadcast %cst_11 : f32 to vector<128x128xf32>
    %16 = arith.mulf %15, %14 : vector<128x128xf32>
    %17 = arith.maximumf %14, %16 : vector<128x128xf32>
    %c0_12 = arith.constant 0 : index
    %c0_13 = arith.constant 0 : index
    %18 = vector.load %arg6[%c0_12, %c0_13] : memref<1x128xf32, #tpu.memory_space<vmem>>, vector<1x128xf32>
    %cst_14 = arith.constant dense<0.000000e+00> : vector<1x128xf32>
    %19 = tpu.matmul %18, %17, %cst_14 {dimension_numbers = #tpu.dot_dimension_numbers<[1], [0], [0], [1], [0, 0, 1, 1], [], []>} : vector<1x128xf32>, vector<128x128xf32>, vector<1x128xf32> -> vector<1x128xf32>
    %c0_15 = arith.constant 0 : index
    %c0_16 = arith.constant 0 : index
    %20 = vector.load %arg7[%c0_15, %c0_16] : memref<1x1xf32, #tpu.memory_space<vmem>>, vector<1x1xf32>
    %21 = vector.broadcast %20 : vector<1x1xf32> to vector<1x128xf32>
    %22 = arith.addf %19, %21 : vector<1x128xf32>
    %23 = arith.negf %22 : vector<1x128xf32>
    %24 = math.exp %23 : vector<1x128xf32>
    %cst_17 = arith.constant 1.000000e+00 : f32
    %25 = vector.broadcast %cst_17 : f32 to vector<1x128xf32>
    %26 = arith.addf %25, %24 : vector<1x128xf32>
    %27 = arith.divf %25, %26 : vector<1x128xf32>
    %c0_18 = arith.constant 0 : index
    %c0_19 = arith.constant 0 : index
    %28 = vector.load %arg8[%c0_18, %c0_19] : memref<1x128xf32, #tpu.memory_space<vmem>>, vector<1x128xf32>
    tpu.vector_store %arg8[%c0_18, %c0_19], %27 {strides = array<i32>} : memref<1x128xf32, #tpu.memory_space<vmem>>, vector<1x128xf32>,
    return
  }
  func.func @transform_0(%arg0: i32) -> (i32, i32) {
    %c0_i32 = arith.constant 0 : i32
    %c0_i32_0 = arith.constant 0 : i32
    return %c0_i32, %arg0 : i32, i32
  }
  func.func @transform_1(%arg0: i32) -> (i32, i32) {
    %c0_i32 = arith.constant 0 : i32
    %c0_i32_0 = arith.constant 0 : i32
    %c0_i32_1 = arith.constant 0 : i32
    return %c0_i32, %c0_i32_0 : i32, i32
  }
  func.func @transform_2(%arg0: i32) -> (i32, i32) {
    %c0_i32 = arith.constant 0 : i32
    %c0_i32_0 = arith.constant 0 : i32
    %c0_i32_1 = arith.constant 0 : i32
    return %c0_i32, %c0_i32_0 : i32, i32
  }
  func.func @transform_3(%arg0: i32) -> (i32, i32) {
    %c0_i32 = arith.constant 0 : i32
    %c0_i32_0 = arith.constant 0 : i32
    %c0_i32_1 = arith.constant 0 : i32
    return %c0_i32, %c0_i32_0 : i32, i32
  }
  func.func @transform_4(%arg0: i32) -> (i32, i32) {
    %c0_i32 = arith.constant 0 : i32
    %c0_i32_0 = arith.constant 0 : i32
    %c0_i32_1 = arith.constant 0 : i32
    return %c0_i32, %c0_i32_0 : i32, i32
  }
  func.func @transform_5(%arg0: i32) -> (i32, i32) {
    %c0_i32 = arith.constant 0 : i32
    %c0_i32_0 = arith.constant 0 : i32
    %c0_i32_1 = arith.constant 0 : i32
    return %c0_i32, %c0_i32_0 : i32, i32
  }
  func.func @transform_6(%arg0: i32) -> (i32, i32) {
    %c0_i32 = arith.constant 0 : i32
    %c0_i32_0 = arith.constant 0 : i32
    %c0_i32_1 = arith.constant 0 : i32
    return %c0_i32, %c0_i32_0 : i32, i32
  }
  func.func @transform_7(%arg0: i32) -> (i32, i32) {
    %c0_i32 = arith.constant 0 : i32
    %c0_i32_0 = arith.constant 0 : i32
    return %c0_i32, %arg0 : i32, i32
  }
}

</mosaic_0001>

<bundles_post_ra>
// kernel: tpu_custom_call.1
= control target key start
LH: loop header
LB: loop body
LE: loop exit
PB: predicated region body
PF: predicated region fallthrough
CT: control target
= control target key end

     0   :  { %s1645_s0 = inlined_call_operand.vmem [shape: f32[4,128], index: 0, kind: input, shape index: {}]   ;;  %s1646_s1 = inlined_call_operand.vmem [shape: f32[256,4], index: 1, kind: input, shape index: {}]   ;;  %s1647_s2 = inlined_call_operand.vmem [shape: f32[256,1], index: 2, kind: input, shape index: {}]   ;;  %s1648_s3 = inlined_call_operand.vmem [shape: bf16[128,256], index: 3, kind: input, shape index: {}]   ;;  %s1649_s4 = inlined_call_operand.vmem [shape: f32[128,1], index: 4, kind: input, shape index: {}]   ;;  %s1650_s5 = inlined_call_operand.vmem [shape: f32[1,128], index: 5, kind: input, shape index: {}]   ;;  %s1651_s6 = inlined_call_operand.<no memory space> [shape: f32[1,1], index: 6, kind: input, shape index: {}]   ;;  %s1652_s7 = inlined_call_operand.hbm [shape: f32[1,128], index: 7, kind: output, shape index: {}]  }
   0x1   :  { %v12_v0 = vstv %s1651_s6 }
   0x2   :  { %13 = vst [vmem:[#allocation2] sm:$0x1] %v12_v0 }
   0x3   :  { %v29_v1 = vld [vmem:[%s1645_s0] sm:$0xf]  ;;  %vm351_vm0 = vcmask 1043456   ;;  %v92_v2 = vld [vmem:[%s1647_s2 + $0xf0] sm:$0xff]  ;;  %v1084_v3 = vmov 0   ;;  %vm254_vm1 = vcmask 31744  }
   0x4   :  { %1053 = vset.pattern.permute.xlu2 %v1084_v3  ;;  %1052 = vset.pattern.permute.xlu1 %v1084_v3  ;;  %v90_v4 = vld [vmem:[%s1647_s2 + $0xe0] sm:$0xff]  ;;  %v76_v5 = vld [vmem:[%s1647_s2 + $0x70] sm:$0xff]  ;;  %v49_v7 = vld [vmem:[%s1646_s1 + $0x98] sm:$0xff] }
   0x5   :  { %1051 = vset.pattern.permute.xlu0 %v1084_v3  ;;  %934 = vmatpush.msk.msra.mxu0 %vm351_vm0, %v29_v1  ;;  %v30_v6 = vld [vmem:[%s1646_s1] sm:$0xff]  ;;  %v93_v8 = vld [vmem:[%s1647_s2 + $0xf8] sm:$0xff]  ;;  %v91_v9 = vld [vmem:[%s1647_s2 + $0xe8] sm:$0xff] }
   0x6   :  { %1048 = vmatpush.msk.msra.mxu3 %vm351_vm0, %v29_v1  ;;  %246 = vperm.xlu0 %1051, %v92_v2   ;;  %v77_v10 = vld [vmem:[%s1647_s2 + $0x78] sm:$0xff] }
   0x7   :  { %236 = vperm.xlu2 %1053, %v90_v4   ;;  %166 = vperm.xlu1 %1052, %v76_v5  }
   0x8   :  { %935 = vmatmul.msk.f32.vlgmr.msra.gmra.mxu0 %vm254_vm1, %v30_v6  ;;  %954 = vmatmul.msk.f32.vlgmr.msra.gmra.mxu3 %vm254_vm1, %v49_v7 }
   0x9   :  { %14 = vsyncpa [#allocation4], 0  ;;  %v31_v11 = vld [vmem:[%s1646_s1 + $0x8] sm:$0xff]  ;;  %v50_v12 = vld [vmem:[%s1646_s1 + $0xa0] sm:$0xff]  ;;  %s1085_s17 = smov [#allocation3]   ;;  %s925_s20 = sshll.u32 %s1652_s7, 4  ;;  %s926_s20 = int_to_ptr.hbm [resolvable:$true] %s925_s20 }
   0xa   :  { %v74_v13 = vld [vmem:[%s1647_s2 + $0x60] sm:$0xff]  ;;  %v88_v14 = vld [vmem:[%s1647_s2 + $0xd0] sm:$0xff]  ;;  %v75_v15 = vld [vmem:[%s1647_s2 + $0x68] sm:$0xff] }
   0xb   :  { %v32_v16 = vld [vmem:[%s1646_s1 + $0x10] sm:$0xff]  ;;  %v51_v17 = vld [vmem:[%s1646_s1 + $0xa8] sm:$0xff]  ;;  %v89_v18 = vld [vmem:[%s1647_s2 + $0xd8] sm:$0xff] }
   0xc   :  { %v73_v19 = vld [vmem:[%s1647_s2 + $0x58] sm:$0xff]  ;;  %v72_v20 = vld [vmem:[%s1647_s2 + $0x50] sm:$0xff]  ;;  %v86_v23 = vld [vmem:[%s1647_s2 + $0xc0] sm:$0xff] }
   0xd   :  { %v33_v21 = vld [vmem:[%s1646_s1 + $0x18] sm:$0xff]  ;;  %v52_v22 = vld [vmem:[%s1646_s1 + $0xb0] sm:$0xff]  ;;  %v87_v24 = vld [vmem:[%s1647_s2 + $0xc8] sm:$0xff] }
   0xe   :  { %251 = vperm.xlu0 %1051, %v93_v8   ;;  %v70_v25 = vld [vmem:[%s1647_s2 + $0x40] sm:$0xff]  ;;  %v53_v27 = vld [vmem:[%s1646_s1 + $0xb8] sm:$0xff]  ;;  %v71_v28 = vld [vmem:[%s1647_s2 + $0x48] sm:$0xff] }
   0xf   :  { %241 = vperm.xlu2 %1053, %v91_v9   ;;  %171 = vperm.xlu1 %1052, %v77_v10   ;;  %v34_v26 = vld [vmem:[%s1646_s1 + $0x20] sm:$0xff]  ;;  %v84_v29 = vld [vmem:[%s1647_s2 + $0xb0] sm:$0xff]  ;;  %v85_v30 = vld [vmem:[%s1647_s2 + $0xb8] sm:$0xff] }
  0x10   :  { %936 = vmatmul.msk.f32.gmra.mxu0 %vm254_vm1, %v31_v11  ;;  %955 = vmatmul.msk.f32.gmra.mxu3 %vm254_vm1, %v50_v12  ;;  %v35_v31 = vld [vmem:[%s1646_s1 + $0x28] sm:$0xff]  ;;  %v54_v32 = vld [vmem:[%s1646_s1 + $0xc0] sm:$0xff]  ;;  %v68_v33 = vld [vmem:[%s1647_s2 + $0x30] sm:$0xff] }
  0x11   :  { %v82_v34 = vld [vmem:[%s1647_s2 + $0xa0] sm:$0xff]  ;;  %v69_v35 = vld [vmem:[%s1647_s2 + $0x38] sm:$0xff]  ;;  %v36_v36 = vld [vmem:[%s1646_s1 + $0x30] sm:$0xff] }
  0x12   :  { %v55_v37 = vld [vmem:[%s1646_s1 + $0xc8] sm:$0xff]  ;;  %v66_v40 = vld [vmem:[%s1647_s2 + $0x20] sm:$0xff]  ;;  %v37_v41 = vld [vmem:[%s1646_s1 + $0x38] sm:$0xff] }
  0x13   :  { %v83_v38 = vld [vmem:[%s1647_s2 + $0xa8] sm:$0xff]  ;;  %v56_v42 = vld [vmem:[%s1646_s1 + $0xd0] sm:$0xff]  ;;  %v81_v44 = vld [vmem:[%s1647_s2 + $0x98] sm:$0xff] }
  0x14   :  { %v67_v39 = vld [vmem:[%s1647_s2 + $0x28] sm:$0xff]  ;;  %v80_v43 = vld [vmem:[%s1647_s2 + $0x90] sm:$0xff]  ;;  %v38_v46 = vld [vmem:[%s1646_s1 + $0x40] sm:$0xff] }
  0x15   :  { %v64_v45 = vld [vmem:[%s1647_s2 + $0x10] sm:$0xff]  ;;  %v57_v47 = vld [vmem:[%s1646_s1 + $0xd8] sm:$0xff]  ;;  %v78_v49 = vld [vmem:[%s1647_s2 + $0x80] sm:$0xff] }
  0x16   :  { %156 = vperm.xlu0 %1051, %v74_v13   ;;  %v65_v48 = vld [vmem:[%s1647_s2 + $0x18] sm:$0xff]  ;;  %v79_v50 = vld [vmem:[%s1647_s2 + $0x88] sm:$0xff]  ;;  %v58_v52 = vld [vmem:[%s1646_s1 + $0xe0] sm:$0xff] }
  0x17   :  { %226 = vperm.xlu2 %1053, %v88_v14   ;;  %161 = vperm.xlu1 %1052, %v75_v15   ;;  %v39_v51 = vld [vmem:[%s1646_s1 + $0x48] sm:$0xff]  ;;  %v62_v53 = vld [vmem:[%s1647_s2] sm:$0xff]  ;;  %v579_v54 = vld [vmem:[%s1649_s4 + $0x78] sm:$0xff] }
  0x18   :  { %937 = vmatmul.msk.f32.gmra.mxu0 %vm254_vm1, %v32_v16  ;;  %956 = vmatmul.msk.f32.gmra.mxu3 %vm254_vm1, %v51_v17  ;;  %v63_v55 = vld [vmem:[%s1647_s2 + $0x8] sm:$0xff]  ;;  %v40_v56 = vld [vmem:[%s1646_s1 + $0x50] sm:$0xff]  ;;  %v576_v59 = vld [vmem:[%s1649_s4 + $0x60] sm:$0xff] }
  0x19   :  { %v59_v57 = vld [vmem:[%s1646_s1 + $0xe8] sm:$0xff]  ;;  %v578_v58 = vld [vmem:[%s1649_s4 + $0x70] sm:$0xff]  ;;  %v41_v61 = vld [vmem:[%s1646_s1 + $0x58] sm:$0xff] }
  0x1a   :  { %v577_v60 = vld [vmem:[%s1649_s4 + $0x68] sm:$0xff]  ;;  %v60_v62 = vld [vmem:[%s1646_s1 + $0xf0] sm:$0xff]  ;;  %v575_v63 = vld [vmem:[%s1649_s4 + $0x58] sm:$0xff] }
  0x1b   :  { %v573_v0 = vld [vmem:[%s1649_s4 + $0x48] sm:$0xff]  ;;  %v574_v1 = vld [vmem:[%s1649_s4 + $0x50] sm:$0xff]  ;;  %v42_v2 = vld [vmem:[%s1646_s1 + $0x60] sm:$0xff] }
  0x1c   :  { %v61_v3 = vld [vmem:[%s1646_s1 + $0xf8] sm:$0xff]  ;;  %v572_v5 = vld [vmem:[%s1649_s4 + $0x40] sm:$0xff]  ;;  %v570_v6 = vld [vmem:[%s1649_s4 + $0x30] sm:$0xff] }
  0x1d   :  { %v571_v7 = vld [vmem:[%s1649_s4 + $0x38] sm:$0xff]  ;;  %v43_v8 = vld [vmem:[%s1646_s1 + $0x68] sm:$0xff]  ;;  %v568_v12 = vld [vmem:[%s1649_s4 + $0x20] sm:$0xff] }
  0x1e   :  { %231 = vperm.xlu0 %1051, %v89_v18   ;;  %v569_v10 = vld [vmem:[%s1649_s4 + $0x28] sm:$0xff]  ;;  %v567_v11 = vld [vmem:[%s1649_s4 + $0x18] sm:$0xff]  ;;  %v44_v13 = vld [vmem:[%s1646_s1 + $0x70] sm:$0xff] }
  0x1f   :  { %151 = vperm.xlu2 %1053, %v73_v19   ;;  %146 = vperm.xlu1 %1052, %v72_v20   ;;  %v566_v17 = vld [vmem:[%s1649_s4 + $0x10] sm:$0xff]  ;;  %v564_v18 = vld [vmem:[%s1649_s4] sm:$0xff]  ;;  %v565_v19 = vld [vmem:[%s1649_s4 + $0x8] sm:$0xff] }
  0x20   :  { %938 = vmatmul.msk.f32.gmra.mxu0 %vm254_vm1, %v33_v21  ;;  %957 = vmatmul.msk.f32.gmra.mxu3 %vm254_vm1, %v52_v22  ;;  %v45_v20 = vld [vmem:[%s1646_s1 + $0x78] sm:$0xff] }
  0x26   :  { %216 = vperm.xlu0 %1051, %v86_v23   ;;  %v871_v23 = vld [vmem:[#allocation2] sm:$0x1] }
  0x27   :  { %221 = vperm.xlu1 %1052, %v87_v24   ;;  %136 = vperm.xlu2 %1053, %v70_v25  }
  0x28   :  { %939 = vmatmul.msk.f32.gmra.mxu0 %vm254_vm1, %v34_v26  ;;  %958 = vmatmul.msk.f32.gmra.mxu3 %vm254_vm1, %v53_v27  ;;  %v46_v26 = vld [vmem:[%s1646_s1 + $0x80] sm:$0xff] }
  0x2e   :  { %141 = vperm.xlu0 %1051, %v71_v28  }
  0x2f   :  { %206 = vperm.xlu1 %1052, %v84_v29   ;;  %211 = vperm.xlu2 %1053, %v85_v30  }
  0x30   :  { %940 = vmatmul.msk.f32.gmra.mxu0 %vm254_vm1, %v35_v31  ;;  %959 = vmatmul.msk.f32.gmra.mxu3 %vm254_vm1, %v54_v32  ;;  %v47_v31 = vld [vmem:[%s1646_s1 + $0x88] sm:$0xff] }
  0x36   :  { %126 = vperm.xlu0 %1051, %v68_v33  }
  0x37   :  { %196 = vperm.xlu2 %1053, %v82_v34   ;;  %131 = vperm.xlu1 %1052, %v69_v35  }
  0x38   :  { %941 = vmatmul.msk.f32.gmra.mxu0 %vm254_vm1, %v36_v36  ;;  %960 = vmatmul.msk.f32.gmra.mxu3 %vm254_vm1, %v55_v37  ;;  %v48_v37 = vld [vmem:[%s1646_s1 + $0x90] sm:$0xff] }
  0x3e   :  { %201 = vperm.xlu0 %1051, %v83_v38  }
  0x3f   :  { %121 = vperm.xlu2 %1053, %v67_v39   ;;  %116 = vperm.xlu1 %1052, %v66_v40  }
  0x40   :  { %942 = vmatmul.msk.f32.gmra.mxu0 %vm254_vm1, %v37_v41  ;;  %961 = vmatmul.msk.f32.gmra.mxu3 %vm254_vm1, %v56_v42 }
  0x46   :  { %186 = vperm.xlu0 %1051, %v80_v43  }
  0x47   :  { %191 = vperm.xlu1 %1052, %v81_v44   ;;  %106 = vperm.xlu2 %1053, %v64_v45  }
  0x48   :  { %943 = vmatmul.msk.f32.gmra.mxu0 %vm254_vm1, %v38_v46  ;;  %962 = vmatmul.msk.f32.gmra.mxu3 %vm254_vm1, %v57_v47 }
  0x4e   :  { %111 = vperm.xlu0 %1051, %v65_v48  }
  0x4f   :  { %176 = vperm.xlu1 %1052, %v78_v49   ;;  %181 = vperm.xlu2 %1053, %v79_v50  }
  0x50   :  { %944 = vmatmul.msk.f32.gmra.mxu0 %vm254_vm1, %v39_v51  ;;  %963 = vmatmul.msk.f32.gmra.mxu3 %vm254_vm1, %v58_v52 }
  0x56   :  { %96 = vperm.xlu0 %1051, %v62_v53  }
  0x57   :  { %657 = vperm.xlu2 %1053, %v579_v54   ;;  %101 = vperm.xlu1 %1052, %v63_v55  }
  0x58   :  { %945 = vmatmul.msk.f32.gmra.mxu0 %vm254_vm1, %v40_v56  ;;  %964 = vmatmul.msk.f32.gmra.mxu3 %vm254_vm1, %v59_v57 }
  0x5e   :  { %652 = vperm.xlu0 %1051, %v578_v58  }
  0x5f   :  { %642 = vperm.xlu2 %1053, %v576_v59   ;;  %647 = vperm.xlu1 %1052, %v577_v60  }
  0x60   :  { %946 = vmatmul.msk.f32.gmra.mxu0 %vm254_vm1, %v41_v61  ;;  %965 = vmatmul.msk.f32.gmra.mxu3 %vm254_vm1, %v60_v62 }
  0x61   :  { %v1351_v4 = vpop.permute.xlu2 %236 }
  0x66   :  { %637 = vperm.xlu0 %1051, %v575_v63  }
  0x67   :  { %627 = vperm.xlu2 %1053, %v573_v0   ;;  %632 = vperm.xlu1 %1052, %v574_v1  }
  0x68   :  { %947 = vmatmul.msk.f32.gmra.mxu0 %vm254_vm1, %v42_v2  ;;  %966 = vmatmul.msk.f32.gmra.mxu3 %vm254_vm1, %v61_v3 }
  0x69   :  { %v1368_v9 = vpop.permute.xlu2 %241 }
  0x6e   :  { %622 = vperm.xlu0 %1051, %v572_v5  }
  0x6f   :  { %612 = vperm.xlu2 %1053, %v570_v6   ;;  %617 = vperm.xlu1 %1052, %v571_v7  }
  0x70   :  { %948 = vmatmul.msk.f32.gmra.mxu0 %vm254_vm1, %v43_v8 }
  0x71   :  { %v1387_v16 = vpop.permute.xlu2 %226 }
  0x76   :  { %607 = vperm.xlu0 %1051, %v569_v10  }
  0x77   :  { %597 = vperm.xlu2 %1053, %v567_v11   ;;  %602 = vperm.xlu1 %1052, %v568_v12  }
  0x78   :  { %949 = vmatmul.msk.f32.gmra.mxu0 %vm254_vm1, %v44_v13  ;;  %v1383_v14 = vpop.permute.xlu0 %246 }
  0x79   :  { %v1385_v15 = vpop.permute.xlu1 %166  ;;  %v1406_v24 = vpop.permute.xlu2 %151 }
  0x7e   :  { %592 = vperm.xlu0 %1051, %v566_v17  }
  0x7f   :  { %582 = vperm.xlu2 %1053, %v564_v18   ;;  %587 = vperm.xlu1 %1052, %v565_v19  }
  0x80   :  { %950 = vmatmul.msk.f32.gmra.mxu0 %vm254_vm1, %v45_v20  ;;  %v1402_v21 = vpop.permute.xlu0 %251 }
  0x81   :  { %v1404_v22 = vpop.permute.xlu1 %171  ;;  %v1425_v32 = vpop.permute.xlu2 %136 }
  0x85   :  { %v1408_v25 = vpop.f32.mrf.mxu0 }
  0x86   :  { %874 = vperm.xlu0 %1051, %v871_v23  }
  0x88   :  { %951 = vmatmul.msk.f32.gmra.mxu0 %vm254_vm1, %v46_v26  ;;  %v1414_v27 = vpop.permute.xlu0 %156 }
  0x89   :  { %v1416_v28 = vpop.permute.xlu1 %161  ;;  %v212_v39 = vpop.permute.xlu2 %211 }
  0x8b   :  { %v1418_v29 = vpop.f32.mrf.mxu3 }
  0x8d   :  { %v1420_v30 = vpop.f32.mrf.mxu0 }
  0x90   :  { %952 = vmatmul.msk.f32.gmra.mxu0 %vm254_vm1, %v47_v31  ;;  %v1428_v33 = vpop.permute.xlu0 %231 }
  0x91   :  { %v1430_v34 = vpop.permute.xlu1 %146  ;;  %v197_v45 = vpop.permute.xlu2 %196 }
  0x93   :  { %v432_v35 = vpop.f32.mrf.mxu3 }
  0x94   :  { %v433_v54 = vadd.f32 %v432_v35, %v197_v45 }
  0x95   :  { %v378_v36 = vpop.f32.mrf.mxu0 }
  0x96   :  { %v488_v62 = vmul.f32 0.2, %v433_v54 }
  0x98   :  { %953 = vmatmul.msk.f32.gmra.mxu0 %vm254_vm1, %v48_v37  ;;  %v1436_v38 = vpop.permute.xlu0 %216  ;;  %v520_v8 = vmax.f32 %v433_v54, %v488_v62 }
  0x99   :  { %v1438_v40 = vpop.permute.xlu1 %221  ;;  %v122_v55 = vpop.permute.xlu2 %121 }
  0x9b   :  { %v435_v41 = vpop.f32.mrf.mxu3 }
  0x9d   :  { %v381_v42 = vpop.f32.mrf.mxu0 }
  0xa0   :  { %v1440_v43 = vpop.permute.xlu0 %141 }
  0xa1   :  { %v207_v44 = vpop.permute.xlu1 %206  ;;  %v107_v23 = vpop.permute.xlu2 %106 }
  0xa2   :  { %v379_v35 = vadd.f32 %v378_v36, %v107_v23 }
  0xa3   :  { %v438_v46 = vpop.f32.mrf.mxu3 }
  0xa4   :  { %v439_v48 = vadd.f32 %v438_v46, %v207_v44  ;;  %v470_v46 = vmul.f32 0.2, %v379_v35 }
  0xa5   :  { %v384_v47 = vpop.f32.mrf.mxu0 }
  0xa6   :  { %v490_v51 = vmul.f32 0.2, %v439_v48 }
  0xa8   :  { %v127_v49 = vpop.permute.xlu0 %126  ;;  %v522_v57 = vmax.f32 %v439_v48, %v490_v51 }
  0xa9   :  { %v132_v50 = vpop.permute.xlu1 %131 }
  0xab   :  { %v441_v52 = vpop.f32.mrf.mxu3 }
  0xac   :  { %v442_v53 = vadd.f32 %v441_v52, %v212_v39 }
  0xad   :  { %v387_v56 = vpop.f32.mrf.mxu0 }
  0xae   :  { %v491_v58 = vmul.f32 0.2, %v442_v53  ;;  %v388_v59 = vadd.f32 %v387_v56, %v122_v55  ;;  %v502_v56 = vmax.f32 %v379_v35, %v470_v46 }
  0xb0   :  { %v523_v60 = vmax.f32 %v442_v53, %v491_v58  ;;  %v202_v61 = vpop.permute.xlu0 %201  ;;  %v473_v1 = vmul.f32 0.2, %v388_v59 }
  0xb1   :  { %v436_v63 = vadd.f32 %v435_v41, %v202_v61  ;;  %v117_v0 = vpop.permute.xlu1 %116 }
  0xb2   :  { %v385_v2 = vadd.f32 %v384_v47, %v117_v0  ;;  %v1442_v3 = vpack.c.bf16 %v523_v60, %v522_v57  ;;  %v505_v12 = vmax.f32 %v388_v59, %v473_v1 }
  0xb3   :  { %v489_v5 = vmul.f32 0.2, %v436_v63  ;;  %v1444_v6 = vpop.f32.mrf.mxu3 }
  0xb4   :  { %v472_v7 = vmul.f32 0.2, %v385_v2 }
  0xb5   :  { %v521_v10 = vmax.f32 %v436_v63, %v489_v5  ;;  %v390_v11 = vpop.f32.mrf.mxu0 }
  0xb6   :  { %v504_v13 = vmax.f32 %v385_v2, %v472_v7  ;;  %v391_v26 = vadd.f32 %v390_v11, %v127_v49 }
  0xb7   :  { %v1446_v17 = vpack.c.bf16 %v521_v10, %v520_v8 }
  0xb8   :  { %v1448_v18 = vpop.permute.xlu0 %186  ;;  %v1450_v19 = vpack.c.bf16 %v505_v12, %v504_v13  ;;  %v474_v39 = vmul.f32 0.2, %v391_v26 }
  0xb9   :  { %v1452_v20 = vpop.permute.xlu1 %191 }
  0xba   :  { %v506_v51 = vmax.f32 %v391_v26, %v474_v39 }
  0xbb   :  { %v447_v31 = vpop.f32.mrf.mxu3 }
  0xbd   :  { %v393_v37 = vpop.f32.mrf.mxu0 }
  0xbe   :  { %v394_v41 = vadd.f32 %v393_v37, %v132_v50 }
  0xc0   :  { %v475_v44 = vmul.f32 0.2, %v394_v41  ;;  %v112_v45 = vpop.permute.xlu0 %111 }
  0xc1   :  { %v1454_v47 = vpop.permute.xlu1 %176  ;;  %v382_v48 = vadd.f32 %v381_v42, %v112_v45 }
  0xc2   :  { %v507_v52 = vmax.f32 %v394_v41, %v475_v44 }
  0xc3   :  { %v471_v53 = vmul.f32 0.2, %v382_v48  ;;  %v450_v54 = vpop.f32.mrf.mxu3 }
  0xc4   :  { %v1456_v55 = vpack.c.bf16 %v507_v52, %v506_v51  ;;  %v451_v39 = vadd.f32 %v450_v54, %v1387_v16 }
  0xc5   :  { %v503_v57 = vmax.f32 %v382_v48, %v471_v53  ;;  %v1458_v49 = vpop.f32.mrf.mxu0 }
  0xc6   :  { %v494_v52 = vmul.f32 0.2, %v451_v39 }
  0xc7   :  { %v1460_v36 = vpack.c.bf16 %v503_v57, %v502_v56 }
  0xc8   :  { %v97_v58 = vpop.permute.xlu0 %96 }
  0xc9   :  { %v102_v50 = vpop.permute.xlu1 %101  ;;  %v373_v59 = vadd.f32 %v1408_v25, %v97_v58 }
  0xca   :  { %v376_v60 = vadd.f32 %v1420_v30, %v102_v50 }
  0xcb   :  { %v468_v61 = vmul.f32 0.2, %v373_v59  ;;  %v453_v42 = vpop.f32.mrf.mxu3 }
  0xcc   :  { %v469_v62 = vmul.f32 0.2, %v376_v60  ;;  %v454_v41 = vadd.f32 %v453_v42, %v1428_v33  ;;  %v526_v33 = vmax.f32 %v451_v39, %v494_v52 }
  0xcd   :  { %v500_v63 = vmax.f32 %v373_v59, %v468_v61  ;;  %v399_v0 = vpop.f32.mrf.mxu0 }
  0xce   :  { %v501_v1 = vmax.f32 %v376_v60, %v469_v62 }
  0xd0   :  { %v1464_v2 = vpack.c.bf16 %v501_v1, %v500_v63 }
  0xd3   :  { %v456_v5 = vpop.f32.mrf.mxu3 }
  0xd4   :  { %v457_v30 = vadd.f32 %v456_v5, %v1351_v4  ;;  %v495_v4 = vmul.f32 0.2, %v454_v41 }
  0xd5   :  { %v402_v7 = vpop.f32.mrf.mxu0 }
  0xd6   :  { %v496_v46 = vmul.f32 0.2, %v457_v30  ;;  %v527_v58 = vmax.f32 %v454_v41, %v495_v4 }
  0xdb   :  { %v459_v8 = vpop.f32.mrf.mxu3 }
  0xdc   :  { %v460_v25 = vadd.f32 %v459_v8, %v1368_v9  ;;  %v448_v9 = vadd.f32 %v447_v31, %v1438_v40 }
  0xdd   :  { %v405_v10 = vpop.f32.mrf.mxu0 }
  0xde   :  { %v497_v44 = vmul.f32 0.2, %v460_v25  ;;  %v493_v54 = vmul.f32 0.2, %v448_v9  ;;  %v406_v1 = vadd.f32 %v405_v10, %v1406_v24 }
  0xe0   :  { %v529_v53 = vmax.f32 %v460_v25, %v497_v44  ;;  %v525_v60 = vmax.f32 %v448_v9, %v493_v54  ;;  %v1034_v54 = vld [vmem:[%s1648_s3 + $0x14] sm:$0xf] }
  0xe3   :  { %v462_v11 = vpop.f32.mrf.mxu3 }
  0xe4   :  { %v463_v13 = vadd.f32 %v462_v11, %v1383_v14  ;;  %v445_v14 = vadd.f32 %v1444_v6, %v1436_v38  ;;  %v561_v38 = vpack.c.bf16 %v527_v58, %v526_v33  ;;  %v403_v11 = vadd.f32 %v402_v7, %v1430_v34  ;;  %v979_v33 = vld [vmem:[%s1648_s3 + $0x18] sm:$0xf0] }
  0xe5   :  { %v408_v12 = vpop.f32.mrf.mxu0  ;;  %v982_v58 = vor.u32 %v1034_v54, %v979_v33 }
  0xe6   :  { %v498_v26 = vmul.f32 0.2, %v463_v13  ;;  %v492_v57 = vmul.f32 0.2, %v445_v14  ;;  %v409_v31 = vadd.f32 %v408_v12, %v1414_v27  ;;  %v478_v24 = vmul.f32 0.2, %v403_v11 }
  0xe8   :  { %v530_v48 = vmax.f32 %v463_v13, %v498_v26  ;;  %v524_v59 = vmax.f32 %v445_v14, %v492_v57  ;;  %v480_v13 = vmul.f32 0.2, %v409_v31 }
  0xea   :  { %v560_v63 = vpack.c.bf16 %v525_v60, %v524_v59  ;;  %v512_v10 = vmax.f32 %v409_v31, %v480_v13  ;;  %v1037_v59 = vld [vmem:[%s1648_s3 + $0x24] sm:$0xf0]  ;;  %v1036_v60 = vld [vmem:[%s1648_s3 + $0x24] sm:$0xf]  ;;  %v1039_v31 = vld [vmem:[%s1648_s3 + $0x34] sm:$0xf0] }
  0xeb   :  { %v465_v23 = vpop.f32.mrf.mxu3  ;;  %v1003_v13 = vld [vmem:[%s1648_s3 + $0x48] sm:$0xf0] }
  0xec   :  { %v466_v35 = vadd.f32 %v465_v23, %v1402_v21  ;;  %v528_v21 = vmax.f32 %v457_v30, %v496_v46  ;;  %v479_v23 = vmul.f32 0.2, %v406_v1 }
  0xed   :  { %v411_v37 = vpop.f32.mrf.mxu0 }
  0xee   :  { %v499_v45 = vmul.f32 0.2, %v466_v35  ;;  %v562_v50 = vpack.c.bf16 %v529_v53, %v528_v21  ;;  %v412_v40 = vadd.f32 %v411_v37, %v1416_v28  ;;  %v400_v28 = vadd.f32 %v399_v0, %v1440_v43 }
  0xef   :  { %v510_v37 = vmax.f32 %v403_v11, %v478_v24  ;;  %v1040_v11 = vld [vmem:[%s1648_s3 + $0x44] sm:$0xf] }
  0xf0   :  { %v531_v51 = vmax.f32 %v466_v35, %v499_v45  ;;  %v481_v5 = vmul.f32 0.2, %v412_v40  ;;  %v477_v26 = vmul.f32 0.2, %v400_v28  ;;  %v511_v35 = vmax.f32 %v406_v1, %v479_v23  ;;  %v1043_v23 = vld [vmem:[%s1648_s3 + $0x54] sm:$0xf0] }
  0xf2   :  { %v563_v56 = vpack.c.bf16 %v531_v51, %v530_v48  ;;  %v513_v30 = vmax.f32 %v412_v40, %v481_v5  ;;  %v509_v43 = vmax.f32 %v400_v28, %v477_v26  ;;  %v553_v0 = vpack.c.bf16 %v511_v35, %v510_v37  ;;  %v1001_v5 = vld [vmem:[%s1648_s3 + $0x40] sm:$0xf]  ;;  %v1009_v28 = vld [vmem:[%s1648_s3 + $0x50] sm:$0xf]  ;;  %v1045_v35 = vld [vmem:[%s1648_s3 + $0x64] sm:$0xf0] }
  0xf4   :  { %789 = vmatpush.bf16.msra.mxu2 %v563_v56  ;;  %v554_v34 = vpack.c.bf16 %v513_v30, %v512_v10  ;;  %v1042_v30 = vld [vmem:[%s1648_s3 + $0x54] sm:$0xf]  ;;  %v1017_v10 = vld [vmem:[%s1648_s3 + $0x60] sm:$0xf] }
  0xf5   :  { %v414_v16 = vpop.f32.mrf.mxu0  ;;  %v1018_v37 = vor.u32 %v1045_v35, %v1017_v10 }
  0xf6   :  { %v415_v61 = vadd.f32 %v414_v16, %v1385_v15  ;;  %v1035_v16 = vld [vmem:[%s1648_s3 + $0x14] sm:$0xf0] }
  0xf8   :  { %790 = vmatpush.bf16.msra.mxu2 %v562_v50  ;;  %v482_v42 = vmul.f32 0.2, %v415_v61  ;;  %v985_v50 = vld [vmem:[%s1648_s3 + $0x20] sm:$0xf] }
  0xfa   :  { %v514_v15 = vmax.f32 %v415_v61, %v482_v42  ;;  %v987_v61 = vld [vmem:[%s1648_s3 + $0x28] sm:$0xf0]  ;;  %v1038_v42 = vld [vmem:[%s1648_s3 + $0x34] sm:$0xf] }
  0xfb   :  { %v990_v40 = vor.u32 %v1036_v60, %v987_v61 }
  0xfc   :  { %791 = vmatpush.bf16.msra.mxu2 %v561_v38  ;;  %v986_v38 = vor.u32 %v1037_v59, %v985_v50 }
  0xfd   :  { %v417_v6 = vpop.f32.mrf.mxu0 }
  0xfe   :  { %v418_v62 = vadd.f32 %v417_v6, %v1404_v22  ;;  %v397_v22 = vadd.f32 %v1458_v49, %v1425_v32  ;;  %v430_v32 = vadd.f32 %v1418_v29, %v1452_v20  ;;  %v182_v49 = vpop.permute.xlu2 %181  ;;  %v969_v20 = vld [vmem:[%s1648_s3] sm:$0xf]  ;;  %v993_v6 = vld [vmem:[%s1648_s3 + $0x30] sm:$0xf] }
 0x100   :  { %v483_v8 = vmul.f32 0.2, %v418_v62  ;;  %792 = vmatpush.bf16.msra.mxu2 %v560_v63  ;;  %v476_v7 = vmul.f32 0.2, %v397_v22  ;;  %v487_v46 = vmul.f32 0.2, %v430_v32  ;;  %v994_v63 = vor.u32 %v1039_v31, %v993_v6 }
 0x102   :  { %v515_v25 = vmax.f32 %v418_v62, %v483_v8  ;;  %v519_v9 = vmax.f32 %v430_v32, %v487_v46  ;;  %v995_v62 = vld [vmem:[%s1648_s3 + $0x38] sm:$0xf0]  ;;  %v1041_v8 = vld [vmem:[%s1648_s3 + $0x44] sm:$0xf0]  ;;  %v1047_v32 = vld [vmem:[%s1648_s3 + $0x74] sm:$0xf0] }
 0x103   :  { %v998_v1 = vor.u32 %v1038_v42, %v995_v62 }
 0x104   :  { %793 = vmatpush.bf16.msra.mxu2 %v1442_v3  ;;  %v555_v27 = vpack.c.bf16 %v515_v25, %v514_v15  ;;  %v508_v3 = vmax.f32 %v397_v22, %v476_v7  ;;  %v1002_v15 = vor.u32 %v1041_v8, %v1001_v5  ;;  %v1006_v25 = vor.u32 %v1040_v11, %v1003_v13  ;;  %v1019_v7 = vld [vmem:[%s1648_s3 + $0x68] sm:$0xf0] }
 0x105   :  { %v420_v12 = vpop.f32.mrf.mxu0 }
 0x106   :  { %740 = vmatpush.bf16.msra.mxu1 %v555_v27  ;;  %v552_v41 = vpack.c.bf16 %v509_v43, %v508_v3  ;;  %v1011_v27 = vld [vmem:[%s1648_s3 + $0x58] sm:$0xf0]  ;;  %v1566_v24 = vpop.permute.xlu2 %657  ;;  %v1025_v3 = vld [vmem:[%s1648_s3 + $0x70] sm:$0xf] }
 0x107   :  { %v1014_v22 = vor.u32 %v1042_v30, %v1011_v27  ;;  %v1026_v46 = vor.u32 %v1047_v32, %v1025_v3 }
 0x108   :  { %794 = vmatpush.bf16.msra.mxu2 %v1446_v17  ;;  %v421_v17 = vadd.f32 %v420_v12, %v1454_v47  ;;  %v1032_v47 = vld [vmem:[%s1648_s3 + $0x4] sm:$0xf]  ;;  %v1010_v12 = vor.u32 %v1043_v23, %v1009_v28 }
 0x10a   :  { %741 = vmatpush.bf16.msra.mxu1 %v554_v34  ;;  %v484_v52 = vmul.f32 0.2, %v421_v17  ;;  %v1044_v34 = vld [vmem:[%s1648_s3 + $0x64] sm:$0xf] }
 0x10b   :  { %v1022_v43 = vor.u32 %v1044_v34, %v1019_v7 }
 0x10c   :  { %v516_v56 = vmax.f32 %v421_v17, %v484_v52 }
 0x10d   :  { %v423_v39 = vpop.f32.mrf.mxu0 }
 0x10e   :  { %742 = vmatpush.bf16.msra.mxu1 %v553_v0  ;;  %v424_v44 = vadd.f32 %v423_v39, %v182_v49  ;;  %v1571_v26 = vpop.permute.xlu2 %642  ;;  %v1582_v0 = vpop.permute.xlu1 %647  ;;  %v1046_v49 = vld [vmem:[%s1648_s3 + $0x74] sm:$0xf] }
 0x110   :  { %v485_v51 = vmul.f32 0.2, %v424_v44 }
 0x112   :  { %743 = vmatpush.bf16.msra.mxu1 %v552_v41  ;;  %v517_v53 = vmax.f32 %v424_v44, %v485_v51  ;;  %v1589_v41 = vpop.permute.xlu0 %652  ;;  %v1027_v44 = vld [vmem:[%s1648_s3 + $0x78] sm:$0xf0] }
 0x113   :  { %v1030_v17 = vor.u32 %v1046_v49, %v1027_v44 }
 0x115   :  { %v426_v45 = vpop.f32.mrf.mxu0 }
 0x116   :  { %v427_v48 = vadd.f32 %v426_v45, %v1448_v18  ;;  %744 = vmatpush.bf16.msra.mxu1 %v1456_v55  ;;  %v1033_v18 = vld [vmem:[%s1648_s3 + $0x4] sm:$0xf0]  ;;  %v556_v55 = vpack.c.bf16 %v517_v53, %v516_v56  ;;  %v1584_v39 = vpop.permute.xlu2 %627  ;;  %v1600_v45 = vpop.permute.xlu1 %632 }
 0x117   :  { %v970_v21 = vor.u32 %v1033_v18, %v969_v20 }
 0x118   :  { %v486_v14 = vmul.f32 0.2, %v427_v48 }
 0x11a   :  { %v518_v4 = vmax.f32 %v427_v48, %v486_v14  ;;  %745 = vmatpush.bf16.msra.mxu1 %v1450_v19  ;;  %v971_v19 = vld [vmem:[%s1648_s3 + $0x8] sm:$0xf0]  ;;  %v1602_v51 = vpop.permute.xlu0 %637 }
 0x11b   :  { %v974_v57 = vor.u32 %v1032_v47, %v971_v19 }
 0x11c   :  { %v557_v29 = vpack.c.bf16 %v519_v9, %v518_v4 }
 0x11e   :  { %746 = vmatpush.bf16.msra.mxu1 %v1460_v36  ;;  %795 = vmatpush.bf16.msra.mxu2 %v557_v29  ;;  %v977_v36 = vld [vmem:[%s1648_s3 + $0x10] sm:$0xf]  ;;  %v613_v48 = vpop.permute.xlu2 %612  ;;  %v618_v14 = vpop.permute.xlu1 %617 }
 0x122   :  { %747 = vmatpush.bf16.msra.mxu1 %v1464_v2  ;;  %796 = vmatpush.bf16.msra.mxu2 %v556_v55  ;;  %v978_v2 = vor.u32 %v1035_v16, %v977_v36  ;;  %v623_v52 = vpop.permute.xlu0 %622 }
 0x125   :  { %748 = vmatmul.bf16.vlgmr.msra.gmra.mxu1 %v970_v21  ;;  %797 = vmatmul.bf16.vlgmr.msra.gmra.mxu2 %v974_v57 }
 0x126   :  { %v598_v9 = vpop.permute.xlu2 %597  ;;  %v603_v53 = vpop.permute.xlu1 %602 }
 0x12a   :  { %v608_v19 = vpop.permute.xlu0 %607 }
 0x12e   :  { %v583_v29 = vpop.permute.xlu2 %582  ;;  %v588_v55 = vpop.permute.xlu1 %587 }
 0x132   :  { %v593_v54 = vpop.permute.xlu0 %592 }
 0x135   :  { %753 = vmatmul.bf16.gmra.mxu1 %v978_v2  ;;  %802 = vmatmul.bf16.gmra.mxu2 %v982_v58 }
 0x145   :  { %758 = vmatmul.bf16.gmra.mxu1 %v986_v38  ;;  %807 = vmatmul.bf16.gmra.mxu2 %v990_v40 }
 0x155   :  { %763 = vmatmul.bf16.gmra.mxu1 %v994_v63  ;;  %812 = vmatmul.bf16.gmra.mxu2 %v998_v1 }
 0x165   :  { %768 = vmatmul.bf16.gmra.mxu1 %v1002_v15  ;;  %817 = vmatmul.bf16.gmra.mxu2 %v1006_v25 }
 0x175   :  { %773 = vmatmul.bf16.gmra.mxu1 %v1010_v12  ;;  %822 = vmatmul.bf16.gmra.mxu2 %v1014_v22 }
 0x185   :  { %778 = vmatmul.bf16.gmra.mxu1 %v1018_v37  ;;  %827 = vmatmul.bf16.gmra.mxu2 %v1022_v43 }
 0x195   :  { %783 = vmatmul.bf16.gmra.mxu1 %v1026_v46  ;;  %832 = vmatmul.bf16.gmra.mxu2 %v1030_v17 }
 0x1a2   :  { %v749_v4 = vpop.f32.mrf.mxu1 }
 0x1a3   :  { %v750_v20 = vadd.f32 %v749_v4, %v583_v29 }
 0x1a8   :  { %v798_v56 = vpop.f32.mrf.mxu2 }
 0x1a9   :  { %v1604_v18 = vadd.f32 %v798_v56, %v750_v20 }
 0x1aa   :  { %v751_v47 = vpop.f32.mrf.mxu1 }
 0x1ab   :  { %v752_v21 = vadd.f32 %v751_v47, %v588_v55 }
 0x1b0   :  { %v800_v57 = vpop.f32.mrf.mxu2 }
 0x1b1   :  { %v1606_v36 = vadd.f32 %v800_v57, %v752_v21 }
 0x1b2   :  { %v754_v16 = vpop.f32.mrf.mxu1 }
 0x1b3   :  { %v755_v33 = vadd.f32 %v754_v16, %v593_v54 }
 0x1b8   :  { %v803_v2 = vpop.f32.mrf.mxu2 }
 0x1b9   :  { %v1608_v58 = vadd.f32 %v803_v2, %v755_v33 }
 0x1ba   :  { %v756_v50 = vpop.f32.mrf.mxu1 }
 0x1bb   :  { %v757_v59 = vadd.f32 %v756_v50, %v598_v9 }
 0x1c0   :  { %v805_v60 = vpop.f32.mrf.mxu2 }
 0x1c1   :  { %v1610_v61 = vadd.f32 %v805_v60, %v757_v59 }
 0x1c2   :  { %v759_v38 = vpop.f32.mrf.mxu1 }
 0x1c3   :  { %v760_v40 = vadd.f32 %v759_v38, %v603_v53 }
 0x1c8   :  { %v808_v6 = vpop.f32.mrf.mxu2 }
 0x1c9   :  { %v1612_v31 = vadd.f32 %v808_v6, %v760_v40 }
 0x1ca   :  { %v761_v42 = vpop.f32.mrf.mxu1 }
 0x1cb   :  { %v762_v62 = vadd.f32 %v761_v42, %v608_v19 }
 0x1d0   :  { %v810_v63 = vpop.f32.mrf.mxu2 }
 0x1d1   :  { %v1614_v1 = vadd.f32 %v810_v63, %v762_v62 }
 0x1d2   :  { %v764_v5 = vpop.f32.mrf.mxu1 }
 0x1d3   :  { %v765_v8 = vadd.f32 %v764_v5, %v613_v48  ;;  %v843_v5 = vmul.f32 0.2, %v1614_v1 }
 0x1d8   :  { %v813_v11 = vpop.f32.mrf.mxu2 }
 0x1d9   :  { %v1616_v13 = vadd.f32 %v813_v11, %v765_v8  ;;  %v842_v11 = vmul.f32 0.2, %v1612_v31 }
 0x1da   :  { %v766_v15 = vpop.f32.mrf.mxu1 }
 0x1db   :  { %v767_v25 = vadd.f32 %v766_v15, %v618_v14  ;;  %v844_v62 = vmul.f32 0.2, %v1616_v13 }
 0x1dd   :  { %v860_v15 = vmax.f32 %v1616_v13, %v844_v62 }
 0x1e0   :  { %v815_v28 = vpop.f32.mrf.mxu2 }
 0x1e1   :  { %v816_v23 = vadd.f32 %v815_v28, %v767_v25  ;;  %v841_v25 = vmul.f32 0.2, %v1610_v61  ;;  %v859_v28 = vmax.f32 %v1614_v1, %v843_v5 }
 0x1e2   :  { %v769_v30 = vpop.f32.mrf.mxu1 }
 0x1e3   :  { %v770_v27 = vadd.f32 %v769_v30, %v623_v52  ;;  %v845_v42 = vmul.f32 0.2, %v816_v23  ;;  %v840_v30 = vmul.f32 0.2, %v1608_v58 }
 0x1e5   :  { %v861_v8 = vmax.f32 %v816_v23, %v845_v42  ;;  %v857_v23 = vmax.f32 %v1610_v61, %v841_v25  ;;  %v856_v13 = vmax.f32 %v1608_v58, %v840_v30 }
 0x1e8   :  { %v818_v12 = vpop.f32.mrf.mxu2 }
 0x1e9   :  { %v819_v22 = vadd.f32 %v818_v12, %v770_v27  ;;  %v858_v27 = vmax.f32 %v1612_v31, %v842_v11  ;;  %v839_v12 = vmul.f32 0.2, %v1606_v36  ;;  %v870_v31 = vld [vmem:[%s1650_s5] sm:$0x1]  ;;  %s923_s5 = sshll.u32 %s1085_s17, 4  ;;  %s924_s5 = int_to_ptr.vmem [resolvable:$true] %s923_s5 }
 0x1ea   :  { %v771_v10 = vpop.f32.mrf.mxu1 }
 0x1f0   :  { %v820_v35 = vpop.f32.mrf.mxu2 }
 0x1f2   :  { %v774_v34 = vpop.f32.mrf.mxu1 }
 0x1f3   :  { %v775_v57 = vadd.f32 %v774_v34, %v1600_v45  ;;  %v846_v45 = vmul.f32 0.2, %v819_v22 }
 0x1f5   :  { %v862_v63 = vmax.f32 %v819_v22, %v846_v45  ;;  %v838_v22 = vmul.f32 0.2, %v1604_v18 }
 0x1f7   :  { %v854_v1 = vmax.f32 %v1604_v18, %v838_v22 }
 0x1f8   :  { %v823_v7 = vpop.f32.mrf.mxu2 }
 0x1f9   :  { %v824_v33 = vadd.f32 %v823_v7, %v775_v57 }
 0x1fa   :  { %v776_v37 = vpop.f32.mrf.mxu1 }
 0x1fb   :  { %v777_v47 = vadd.f32 %v776_v37, %v1602_v51  ;;  %v848_v60 = vmul.f32 0.2, %v824_v33 }
 0x1fd   :  { %v864_v6 = vmax.f32 %v824_v33, %v848_v60 }
 0x200   :  { %v825_v43 = vpop.f32.mrf.mxu2 }
 0x201   :  { %v826_v16 = vadd.f32 %v825_v43, %v777_v47 }
 0x202   :  { %v779_v3 = vpop.f32.mrf.mxu1 }
 0x203   :  { %v780_v29 = vadd.f32 %v779_v3, %v1571_v26  ;;  %v849_v26 = vmul.f32 0.2, %v826_v16 }
 0x205   :  { %v865_v40 = vmax.f32 %v826_v16, %v849_v26 }
 0x208   :  { %v828_v32 = vpop.f32.mrf.mxu2 }
 0x209   :  { %v829_v19 = vadd.f32 %v828_v32, %v780_v29 }
 0x20a   :  { %v781_v49 = vpop.f32.mrf.mxu1 }
 0x20b   :  { %v782_v9 = vadd.f32 %v781_v49, %v1582_v0  ;;  %v772_v0 = vadd.f32 %v771_v10, %v1584_v39  ;;  %v850_v2 = vmul.f32 0.2, %v829_v19  ;;  %v855_v10 = vmax.f32 %v1606_v36, %v839_v12 }
 0x20d   :  { %v821_v50 = vadd.f32 %v820_v35, %v772_v0  ;;  %v866_v51 = vmax.f32 %v829_v19, %v850_v2  ;;  %v875_v35 = vpop.permute.xlu0 %874 }
 0x20e   :  { %v877_v34 = vperm.slane %v875_v35, 0 }
 0x20f   :  { %v847_v38 = vmul.f32 0.2, %v821_v50 }
 0x210   :  { %v830_v44 = vpop.f32.mrf.mxu2 }
 0x211   :  { %v831_v20 = vadd.f32 %v830_v44, %v782_v9  ;;  %v863_v39 = vmax.f32 %v821_v50, %v847_v38 }
 0x212   :  { %v784_v46 = vpop.f32.mrf.mxu1 }
 0x213   :  { %v785_v14 = vadd.f32 %v784_v46, %v1589_v41  ;;  %v851_v54 = vmul.f32 0.2, %v831_v20 }
 0x215   :  { %v867_v59 = vmax.f32 %v831_v20, %v851_v54 }
 0x218   :  { %v833_v17 = vpop.f32.mrf.mxu2 }
 0x219   :  { %v834_v52 = vadd.f32 %v833_v17, %v785_v14 }
 0x21a   :  { %v786_v48 = vpop.f32.mrf.mxu1 }
 0x21b   :  { %v787_v4 = vadd.f32 %v786_v48, %v1566_v24  ;;  %v852_v55 = vmul.f32 0.2, %v834_v52 }
 0x21d   :  { %v868_v24 = vmax.f32 %v834_v52, %v852_v55 }
 0x220   :  { %v835_v53 = vpop.f32.mrf.mxu2 }
 0x221   :  { %v836_v56 = vadd.f32 %v835_v53, %v787_v4 }
 0x223   :  { %v853_v21 = vmul.f32 0.2, %v836_v56 }
 0x225   :  { %v869_v41 = vmax.f32 %v836_v56, %v853_v21 }
 0x227   :  { %878 = vmatpush.msrb.mxu3 %v869_v41 }
 0x229   :  { %879 = vmatpush.msrb.mxu3 %v868_v24 }
 0x22b   :  { %880 = vmatpush.msrb.mxu3 %v867_v59 }
 0x22d   :  { %881 = vmatpush.msrb.mxu3 %v866_v51 }
 0x22f   :  { %882 = vmatpush.msrb.mxu3 %v865_v40 }
 0x231   :  { %883 = vmatpush.msrb.mxu3 %v864_v6 }
 0x233   :  { %884 = vmatpush.msrb.mxu3 %v863_v39 }
 0x235   :  { %885 = vmatpush.msrb.mxu3 %v862_v63 }
 0x237   :  { %886 = vmatpush.msrb.mxu3 %v861_v8 }
 0x239   :  { %887 = vmatpush.msrb.mxu3 %v860_v15 }
 0x23b   :  { %888 = vmatpush.msrb.mxu3 %v859_v28 }
 0x23d   :  { %889 = vmatpush.msrb.mxu3 %v858_v27 }
 0x23f   :  { %890 = vmatpush.msrb.mxu3 %v857_v23 }
 0x241   :  { %891 = vmatpush.msrb.mxu3 %v856_v13 }
 0x243   :  { %892 = vmatpush.msrb.mxu3 %v855_v10 }
 0x245   :  { %893 = vmatpush.msrb.mxu3 %v854_v1 }
 0x246   :  { %894 = vmatmul.f32.vlgmr.msrb.gmra.mxu3 %v870_v31 }
 0x2c9   :  { %v895_v61 = vpop.f32.mrf.mxu3 }
 0x2ca   :  { %v896_v7 = vadd.f32 %v895_v61, %v877_v34 }
 0x2cc   :  { %v1031_v37 = vmul.f32 -1.442695, %v896_v7 }
 0x2ce   :  { %1054 = vpow2.f32 %v1031_v37 }
 0x2d4   :  { %v1055_v43 = vpop.eup %1054 }
 0x2d5   :  { %v901_v58 = vadd.f32 1.0, %v1055_v43 }
 0x2d7   :  { %1056 = vrcp.f32 %v901_v58  ;;  %v913_v49 = vand.u32 2147483648, %v901_v58  ;;  %v911_v44 = vand.u32 2147483647, %v901_v58  ;;  %vm907_vm3 = vweird.f32 %v901_v58 }
 0x2d9   :  { %v914_v17 = vor.u32 1.1754944e-38, %v913_v49  ;;  %vm912_vm5 = vcmp.eq.f32.partialorder %v911_v44, 8.507059e+37 }
 0x2dd   :  { %v1057_v3 = vpop.eup %1056 }
 0x2de   :  { %v903_v36 = vmul.f32 %v1057_v3, %v901_v58  ;;  %vm908_vm2 = vweird.f32 %v1057_v3 }
 0x2df   :  { %vm909_vm4 = vmor %vm907_vm3, %vm908_vm2 }
 0x2e0   :  { %v904_v32 = vsub.f32 1.0, %v903_v36 }
 0x2e2   :  { %v905_v18 = vmul.f32 %v1057_v3, %v904_v32 }
 0x2e4   :  { %v906_v46 = vadd.f32 %v1057_v3, %v905_v18 }
 0x2e6   :  { %v910_v48 = vsel %vm909_vm4, %v1057_v3, %v906_v46 }
 0x2e7   :  { %v915_v14 = vsel %vm912_vm5, %v914_v17, %v910_v48 }
 0x2e8   :  { %917 = vst [vmem:[#allocation3] sm:$0x1] %v915_v14 }
 0x2e9   :  { %928 = dma.vmem_to_hbm [thread:$0]  %s924_s5, 16, %s926_s20, [#allocation4]  }
 0x2ea   :  { %1082 = dma.done.wait [#allocation4], 16  }
 0x2eb   :  { %1083 = vsyncadd [#allocation4], 4294967280 }
 0x2ec   :  { %933 = vsyncpa [#allocation4], 1 }

</bundles_post_ra>
